<compile_context>
chip_gen: v5e
topology: v5e:2x2
jax: 0.10.0
libtpu: 0.0.40
codegen_flags: <defaults>
</compile_context>

<pallas_src>
import numpy as np
import jax
import jax.numpy as jnp
from jax.experimental import pallas as pl
from jax.experimental.pallas import tpu as pltpu

LANE = 128  # TPU lane width (last-dim alignment)


def _round_up(a, b):
    return ((a + b - 1) // b) * b


def _choose_row_tile(n, dt_bytes, budget_bytes=32 << 20):
    """MXU-aligned row tile for the support matrix.

    256 matches the v6e/v7x 256x256 MXU (still a multiple of 128 for v5e's
    128x128 MXU).  Shrink if the double-buffered (tm, N_pad) support tile
    would not fit a conservative VMEM budget (v7x only has 64 MiB physical).
    """
    tm = 256 if n >= 256 else 128
    n_guess = _round_up(n, 128)
    while tm > 128 and 2 * tm * n_guess * dt_bytes > budget_bytes:
        tm -= 128
    return tm


def _make_gcn_kernel(xw_first, compute_dtype):
    def kernel(x_ref, sup_ref, w_ref, out_ref):
        if xw_first:
            # xw = x @ W (tiny, recomputed per row tile so the grid axis is
            # fully parallel), then the big matmul: support_tile @ xw.
            xw = jnp.dot(x_ref[...], w_ref[...],
                         preferred_element_type=jnp.float32)
            out = jnp.dot(sup_ref[...], xw.astype(compute_dtype),
                          preferred_element_type=jnp.float32)
        else:
            # D_out > D_in: contract the N^2 matmul over the smaller D_in.
            sx = jnp.dot(sup_ref[...], x_ref[...],
                         preferred_element_type=jnp.float32)
            out = jnp.dot(sx.astype(compute_dtype), w_ref[...],
                          preferred_element_type=jnp.float32)
        # leaky_relu, negative_slope=0.01 (PyTorch default), in f32.
        out = jnp.maximum(out, 0.01 * out)
        # dropout p=0.0 -> identity (module default); bias=False.
        out_ref[...] = out.astype(out_ref.dtype)
    return kernel


def graph_convolution(x, support, weight, *, compute_dtype=jnp.bfloat16):
    """Forward pass of GraphConvolution. Returns (out, support)."""
    N, d_in = x.shape
    d_out = weight.shape[1]
    assert support.shape == (N, N)
    assert weight.shape[0] == d_in

    dtb = jnp.dtype(compute_dtype).itemsize

    # Lane/MXU-aligned padded shapes (zero padding does not change results).
    d_in_p = _round_up(d_in, LANE)
    d_out_p = _round_up(d_out, LANE)          # lane-dense output (>= 128)
    tm = _choose_row_tile(N, dtb)
    n_p = _round_up(N, tm)
    grid_m = n_p // tm

    x_p = jnp.pad(x.astype(compute_dtype),
                  ((0, n_p - N), (0, d_in_p - d_in)))
    sup_p = jnp.pad(support.astype(compute_dtype),
                    ((0, n_p - N), (0, n_p - N)))
    w_p = jnp.pad(weight.astype(compute_dtype),
                  ((0, d_in_p - d_in), (0, d_out_p - d_out)))

    xw_first = d_out <= d_in

    # Advisory cost estimate for the XLA scheduler.
    if xw_first:
        flops = 2 * grid_m * n_p * d_in_p * d_out_p + 2 * n_p * n_p * d_out_p
    else:
        flops = 2 * n_p * n_p * d_in_p + 2 * n_p * d_in_p * d_out_p
    bytes_accessed = ((n_p * n_p + n_p * d_in_p + d_in_p * d_out_p) * dtb
                      + n_p * d_out_p * 4)

    # Explicit VMEM budget: double-buffered inputs/outputs + f32 intermediate,
    # clamped to v7x's 64 MiB physical VMEM.
    vmem_need = (2 * (tm * n_p + n_p * d_in_p + d_in_p * d_out_p) * dtb
                 + 2 * tm * d_out_p * 4
                 + n_p * d_out_p * 4)
    vmem_limit = int(min(max(vmem_need + (4 << 20), 16 << 20), 64 << 20))

    out_p = pl.pallas_call(
        _make_gcn_kernel(xw_first, compute_dtype),
        out_shape=jax.ShapeDtypeStruct((n_p, d_out_p), jnp.float32),
        grid_spec=pltpu.PrefetchScalarGridSpec(
            num_scalar_prefetch=0,
            grid=(grid_m,),
            in_specs=[
                pl.BlockSpec((n_p, d_in_p), lambda i: (0, 0)),      # x: resident
                pl.BlockSpec((tm, n_p), lambda i: (i, 0)),          # support: row-tiled, pipelined
                pl.BlockSpec((d_in_p, d_out_p), lambda i: (0, 0)),  # W: resident
            ],
            out_specs=pl.BlockSpec((tm, d_out_p), lambda i: (i, 0)),
        ),
        compiler_params=pltpu.CompilerParams(
            dimension_semantics=("parallel",),   # shards row tiles across v7x's 2 TCs
            vmem_limit_bytes=vmem_limit,
        ),
        cost_estimate=pl.CostEstimate(flops=flops, transcendentals=0,
                                      bytes_accessed=bytes_accessed),
    )(x_p, sup_p, w_p)

    # Slice away the alignment padding; support is passed through unchanged.
    return out_p[:N, :d_out], support


def glorot_init(key, input_dim, output_dim):
    # Matches torch glorot_init: uniform in [-r, r], r = sqrt(6/(in+out)).
    init_range = np.sqrt(6.0 / (input_dim + output_dim))
    return jax.random.uniform(
        key, (input_dim, output_dim), dtype=jnp.float32,
        minval=-init_range, maxval=init_range)


def reference(x, support, weight):
    xw = x @ weight
    out = support @ xw
    return jnp.where(out >= 0, out, 0.01 * out)


if __name__ == "__main__":
    key = jax.random.PRNGKey(0)
    k_x, k_sup, k_w, k_w2 = jax.random.split(key, 4)

    N, D_IN, D_OUT = 192, 32, 16

    x = jax.random.normal(k_x, (N, D_IN), dtype=jnp.float32)
    # Symmetric-ish random "support" (normalized adjacency stand-in).
    a = jax.random.uniform(k_sup, (N, N), dtype=jnp.float32)
    support = (a + a.T) / (2.0 * N)
    weight = glorot_init(k_w, D_IN, D_OUT)

    ref = reference(x, support, weight)

    # 1) Default bf16-compute path (MXU-friendly), f32 accumulation.
    out_bf16, sup_out = graph_convolution(x, support, weight)
    out_bf16 = jax.block_until_ready(out_bf16)
    np.testing.assert_allclose(np.asarray(out_bf16), np.asarray(ref),
                               rtol=5e-2, atol=5e-3)
    assert sup_out.shape == support.shape

    # 2) Exact f32 path, tight tolerance.
    out_f32, _ = graph_convolution(x, support, weight,
                                   compute_dtype=jnp.float32)
    out_f32 = jax.block_until_ready(out_f32)
    np.testing.assert_allclose(np.asarray(out_f32), np.asarray(ref),
                               rtol=1e-5, atol=1e-5)

    # 3) Wide-output layer (D_out > D_in) exercises the (support@x)@W ordering.
    D_OUT_WIDE = 96
    weight_wide = glorot_init(k_w2, D_IN, D_OUT_WIDE)
    out_wide, _ = graph_convolution(x, support, weight_wide,
                                    compute_dtype=jnp.float32)
    out_wide = jax.block_until_ready(out_wide)
    ref_wide = reference(x, support, weight_wide)
    np.testing.assert_allclose(np.asarray(out_wide), np.asarray(ref_wide),
                               rtol=1e-5, atol=1e-5)

    # TODO(synk): torch.sparse.mm path (is_sparse_inputs=True) not implemented;
    # module defaults to dense inputs, which is what is reproduced here.

    print("KERNEL_OK")
</pallas_src>

<mosaic_0001>
module attributes {stable_mosaic.version = 11 : i64} {
  func.func @kernel(%arg0: i32, %arg1: memref<256x128xbf16, #tpu.memory_space<vmem>>, %arg2: memref<128x256xbf16, #tpu.memory_space<vmem>>, %arg3: memref<128x128xbf16, #tpu.memory_space<vmem>>, %arg4: memref<128x128xf32, #tpu.memory_space<vmem>>) attributes {dimension_semantics = [#tpu.dimension_semantics<parallel>], iteration_bounds = array<i64: 2>, scalar_prefetch = 0 : i64, scratch_operands = 0 : i64, tpu.core_type = #tpu.core_type<tc>, window_params = [{pipeline_mode = #tpu.pipeline_mode<synchronous>, transform_indices = @transform_0, window_bounds = array<i64: 256, 128>}, {transform_indices = @transform_1, window_bounds = array<i64: 128, 256>}, {pipeline_mode = #tpu.pipeline_mode<synchronous>, transform_indices = @transform_2, window_bounds = array<i64: 128, 128>}, {transform_indices = @transform_3, window_bounds = array<i64: 128, 128>}]} {
    %c0 = arith.constant 0 : index
    %c0_0 = arith.constant 0 : index
    %0 = vector.load %arg1[%c0, %c0_0] : memref<256x128xbf16, #tpu.memory_space<vmem>>, vector<256x128xbf16>
    %c0_1 = arith.constant 0 : index
    %c0_2 = arith.constant 0 : index
    %1 = vector.load %arg3[%c0_1, %c0_2] : memref<128x128xbf16, #tpu.memory_space<vmem>>, vector<128x128xbf16>
    %cst = arith.constant dense<0.000000e+00> : vector<256x128xf32>
    %2 = tpu.matmul %0, %1, %cst {dimension_numbers = #tpu.dot_dimension_numbers<[1], [0], [0], [1], [0, 0, 1, 1], [], []>} : vector<256x128xbf16>, vector<128x128xbf16>, vector<256x128xf32> -> vector<256x128xf32>
    %c0_3 = arith.constant 0 : index
    %c0_4 = arith.constant 0 : index
    %3 = vector.load %arg2[%c0_3, %c0_4] : memref<128x256xbf16, #tpu.memory_space<vmem>>, vector<128x256xbf16>
    %4 = arith.truncf %2 : vector<256x128xf32> to vector<256x128xbf16>
    %cst_5 = arith.constant dense<0.000000e+00> : vector<128x128xf32>
    %5 = tpu.matmul %3, %4, %cst_5 {dimension_numbers = #tpu.dot_dimension_numbers<[1], [0], [0], [1], [0, 0, 1, 1], [], []>} : vector<128x256xbf16>, vector<256x128xbf16>, vector<128x128xf32> -> vector<128x128xf32>
    %cst_6 = arith.constant 0.00999999977 : f32
    %6 = vector.broadcast %cst_6 : f32 to vector<128x128xf32>
    %7 = arith.mulf %6, %5 : vector<128x128xf32>
    %8 = arith.maximumf %5, %7 : vector<128x128xf32>
    %c0_7 = arith.constant 0 : index
    %c0_8 = arith.constant 0 : index
    %9 = vector.load %arg4[%c0_7, %c0_8] : memref<128x128xf32, #tpu.memory_space<vmem>>, vector<128x128xf32>
    tpu.vector_store %arg4[%c0_7, %c0_8], %8 {strides = array<i32>} : memref<128x128xf32, #tpu.memory_space<vmem>>, vector<128x128xf32>,
    return
  }
  func.func @transform_0(%arg0: i32) -> (i32, i32) {
    %c0_i32 = arith.constant 0 : i32
    %c0_i32_0 = arith.constant 0 : i32
    %c0_i32_1 = arith.constant 0 : i32
    return %c0_i32, %c0_i32_0 : i32, i32
  }
  func.func @transform_1(%arg0: i32) -> (i32, i32) {
    %c0_i32 = arith.constant 0 : i32
    %c0_i32_0 = arith.constant 0 : i32
    return %arg0, %c0_i32 : i32, i32
  }
  func.func @transform_2(%arg0: i32) -> (i32, i32) {
    %c0_i32 = arith.constant 0 : i32
    %c0_i32_0 = arith.constant 0 : i32
    %c0_i32_1 = arith.constant 0 : i32
    return %c0_i32, %c0_i32_0 : i32, i32
  }
  func.func @transform_3(%arg0: i32) -> (i32, i32) {
    %c0_i32 = arith.constant 0 : i32
    %c0_i32_0 = arith.constant 0 : i32
    return %arg0, %c0_i32 : i32, i32
  }
}

</mosaic_0001>

<bundles_post_ra>
// kernel: tpu_custom_call.1
= control target key start
LH: loop header
LB: loop body
LE: loop exit
PB: predicated region body
PF: predicated region fallthrough
CT: control target
= control target key end

     0   :  { %8 = vsyncpa [#allocation3], 0  ;;  %s1590_s0 = inlined_call_operand.hbm [shape: bf16[256,128], index: 0, kind: input, shape index: {}]   ;;  %s1591_s1 = inlined_call_operand.hbm [shape: bf16[256,256], index: 1, kind: input, shape index: {}]   ;;  %s1592_s2 = inlined_call_operand.hbm [shape: bf16[128,128], index: 2, kind: input, shape index: {}]   ;;  %s1593_s3 = inlined_call_operand.hbm [shape: f32[256,128], index: 3, kind: output, shape index: {}]  }
   0x1   :  { %9 = vsyncpa [#allocation6], 0 }
   0x2   :  { %11 = vsyncpa [#allocation6 + $0x1], 0 }
   0x3   :  { %12 = vsyncpa [#allocation4], 0 }
   0x4   :  { %14 = vsyncpa [#allocation4 + $0x1], 0  ;;  %s1373_s12 = smov 0   ;;  %s1375_s13 = smov 0  }
   0x5   :  { %s1377_s14 = smov 0   ;;  %s1379_s15 = smov 0  }
   0x6 LB: > { %s1394_s16 = sadd.s32 4294967295, %s1343_s15   ;;  %s876_s17 = sadd.s32 4294967294, %s1343_s15   ;;  %s1343_s15 = sphi %s1379_s15, %s1603_s15   ;;  %s1339_s14 = sphi %s1377_s14, %s1602_s14   ;;  %s1335_s13 = sphi %s1375_s13, %s1601_s13   ;;  %s1331_s12 = sphi %s1373_s12, %s1600_s12  }
   0x7   : > { %p61_p0 = scmp.ne.s32.totalorder %s1335_s13, %s1331_s12  ;;  %p62_p1 = scmp.eq.s32.totalorder %s1394_s16, 0 }
   0x8   : > { %p106_p2 = scmp.eq.s32.totalorder %s1394_s16, 1  ;;  %p112_p3 = scmp.eq.s32.totalorder %s876_s17, 1 }
   0x9   : > { %p1403_p4 = por %p62_p1, %p61_p0  ;;  %p877_p5 = scmp.ge.s32.totalorder %s1343_s15, 1 }
   0xa   : > { %p1408_p6 = por %p112_p3, %p61_p0  ;;  %p119_p7 = scmp.lt.s32.totalorder %s1343_s15, 3 }
   0xb   : > { %s144_s23 = sshll.u32 %s1592_s2, 4  ;;  %s1345_s24 = smov [#allocation7]   ;;  %s145_s23 = int_to_ptr.hbm [resolvable:$true] %s144_s23 }
   0xc   : > { %p1413_p8 = pnand %p877_p5, %p119_p7  ;;  %s146_s25 = sshll.u32 %s1345_s24, 4  ;;  %s147_s25 = int_to_ptr.vmem [resolvable:$true] %s146_s25 }
   0xd   : > { %s130_s28 = sshll.u32 %s1590_s0, 4  ;;  %s1346_s29 = smov 64   ;;  %s131_s28 = int_to_ptr.hbm [resolvable:$true] %s130_s28 }
   0xe   : > { %p1118_p9 = pneg %p1413_p8  ;;  %s1347_s30 = smov 4  }
   0xf   : > { %s1348_s4 = smov [#allocation2]   ;;  %s1429_s6 = sadd.s32 1, %s1343_s15  }
  0x10   : > { %p1119_p11 = pnand %p1118_p9, %p62_p1  ;;  %s132_s5 = sshll.u32 %s1348_s4, 4  ;;  %s133_s5 = int_to_ptr.vmem [resolvable:$true] %s132_s5 }
  0x11   : > { %s48_s7 = sadd.s32 1, %s1339_s14  ;;  %s45_s8 = ssub.s32 %s1343_s15, %s1429_s6 }
  0x12   : > { %1124 = dma.hbm_to_vmem [thread:$0]  (!%p1119_p11), %s145_s23, 1024, %s147_s25, [#allocation6], %s1346_s29, %s1346_s29, %s1347_s30  }
  0x13   : > { %1121 = dma.hbm_to_vmem [thread:$0]  (!%p1119_p11), %s131_s28, 2048, %s133_s5, [#allocation3], %s1346_s29, %s1346_s29, %s1347_s30  }
  0x14   : > { %p55_p12 = scmp.ne.s32.totalorder %s1339_s14, %s1335_s13  ;;  %p46_p13 = scmp.eq.s32.totalorder %s45_s8, 0 }
  0x15   : > { %p56_p0 = scmp.eq.s32.totalorder %s1343_s15, 0  ;;  %p1135_p5 = scmp.lt.s32.totalorder %s1343_s15, 2 }
  0x16   : > { %p1439_p3 = por %p106_p2, %p55_p12  ;;  %s160_s11 = sand.u32 1, %s1343_s15  }
  0x17   : > { %s1445_s10 = scalar_select %p46_p13, %s1339_s14, %s48_s7  }
  0x18   : > { %p57_p7 = por %p56_p0, %p55_p12  ;;  %s162_s17 = sand.u32 1, %s1339_s14  }
  0x19   : > { %s881_s21 = sshll.u32 %s162_s17, 7  ;;  %s1056_s22 = sshll.u32 %s1343_s15, 7 }
  0x1a   : > { %s170_s25 = scalar_lea.hbm %s1591_s1, %s1056_s22  ;;  %s164_s27 = scalar_lea.vmem [#allocation5], %s881_s21 }
  0x1b   : > { %s171_s26 = sshll.u32 %s170_s25, 4  ;;  %s173_s28 = sshll.u32 %s164_s27, 4  ;;  %s172_s26 = int_to_ptr.hbm [resolvable:$true] %s171_s26  ;;  %s174_s28 = int_to_ptr.vmem [resolvable:$true] %s173_s28 }
  0x1c   : > { %p1455_p2 = pnand %p1135_p5, %p57_p7  ;;  %s161_s30 = scalar_lea.sflag [#allocation6], %s160_s11 }
  0x1d   : > { %s1239_s4 = sshra.s32 %s172_s26, 4  ;;  %s1246_s17 = scalar_lea.hbm %s1591_s1, 256  ;;  %s1240_s4 = int_to_ptr.hbm [resolvable:$true] %s1239_s4 }
  0x1e   : > { %s1241_s5 = scalar_lea.hbm %s1240_s4, 128  ;;  %p1243_p11 = pneg %p1455_p2 }
  0x1f   : > { %p1242_p9 = scmp.ne.s32.totalorder %s1240_s4, %s1241_s5  ;;  %p1247_p0 = scmp.lt.s32.totalorder %s1240_s4, %s1591_s1 }
  0x20   : > { %p1248_p5 = scmp.lt.s32.totalorder %s1246_s17, %s1241_s5 }
  0x21   : > { %p1244_p12 = pnand %p1243_p11, %p1242_p9 }
  0x22   : > { %p1249_p7 = por %p1248_p5, %p1247_p0 }
  0x23   : > { %p1245_p13 = pneg %p1244_p12 }
  0x25   : > { %p1250_p10 = pnand %p1249_p7, %p1245_p13 }
  0x27   : > { %1253 = shalt.err (!%p1250_p10)
}
  0x28   : > { %s1349_s11 = smov 128   ;;  %s1350_s23 = smov 8  }
  0x29   : > { %1128 = dma.hbm_to_vmem [thread:$0]  (!%p1455_p2), %s172_s26, 2048, %s174_s28, %s161_s30, %s1349_s11, %s1349_s11, %s1350_s23  }
  0x2a   : > { %185 = sbr.rel (%p1413_p8) target bundleno = 633 (0x279), region = 32 }
  0x2f   : > { %1314 = dma.done.wait (%p62_p1), [#allocation3], 2048  }
  0x30   : > { %1316 = vsyncadd (%p62_p1), [#allocation3], 4294965248  ;;  %s192_s24 = sand.u32 1, %s1394_s16   ;;  %s194_s25 = sand.u32 1, %s1335_s13  }
  0x31   : > { %s1479_s27 = sshll.u32 %s194_s25, 7  ;;  %s193_s26 = scalar_lea.sflag [#allocation6], %s192_s24 }
  0x32   : > { %s1482_s28 = scalar_lea.vmem [#allocation5], %s1479_s27 }
  0x33   : > { %1318 = dma.done.wait (%p1403_p4), %s193_s26, 2048  }
  0x34   : > { %1320 = vsyncadd (%p1403_p4), %s193_s26, 4294965248 }
  0x35   : > { %1322 = dma.done.wait (%p62_p1), [#allocation6], 1024  }
  0x36   : > { %1324 = vsyncadd (%p62_p1), [#allocation6], 4294966272  ;;  %v1080_v0 = vld [vmem:[#allocation7 + $0x38] sm:$0xff]  ;;  %v1079_v1 = vld [vmem:[#allocation7 + $0x30] sm:$0xff]  ;;  %s1537_s18 = scalar_lea.vmem [#allocation8], %s1479_s27  ;;  %s1097_s20 = sshll.u32 %s1394_s16, 7 }
  0x37   : > { %419 = vmatpush.bf16.msra.mxu0 %v1080_v0  ;;  %1098 = vmatpush.bf16.msra.mxu3 %v1080_v0  ;;  %v1078_v2 = vld [vmem:[#allocation7 + $0x28] sm:$0xff]  ;;  %v1077_v3 = vld [vmem:[#allocation7 + $0x20] sm:$0xff]  ;;  %v1076_v4 = vld [vmem:[#allocation7 + $0x18] sm:$0xff]  ;;  %s778_s4 = scalar_lea.hbm %s1593_s3, %s1097_s20  ;;  %s779_s5 = sshll.u32 %s1537_s18, 4  ;;  %s780_s5 = int_to_ptr.vmem [resolvable:$true] %s779_s5 }
  0x38   : > { %v1075_v5 = vld [vmem:[#allocation7 + $0x10] sm:$0xff]  ;;  %v1074_v6 = vld [vmem:[#allocation7 + $0x8] sm:$0xff]  ;;  %v1073_v7 = vld [vmem:[#allocation7] sm:$0xff]  ;;  %s781_s7 = sshll.u32 %s778_s4, 4  ;;  %s767_s8 = scalar_lea.sflag [#allocation4], %s194_s25  ;;  %s782_s7 = int_to_ptr.hbm [resolvable:$true] %s781_s7 }
  0x39   : > { %v1057_v8 = vld [vmem:[#allocation2] sm:$0xff]  ;;  %v1058_v10 = vld [vmem:[#allocation2 + $0x8] sm:$0xff]  ;;  %v1059_v12 = vld [vmem:[#allocation2 + $0x10] sm:$0xff]  ;;  %s1283_s16 = sshra.s32 %s782_s7, 4  ;;  %s1289_s11 = scalar_lea.hbm %s1593_s3, 256  ;;  %s1284_s16 = int_to_ptr.hbm [resolvable:$true] %s1283_s16 }
  0x3a   : > { %v1065_v9 = vld [vmem:[#allocation2 + $0x40] sm:$0xff]  ;;  %v1066_v11 = vld [vmem:[#allocation2 + $0x48] sm:$0xff]  ;;  %v1067_v13 = vld [vmem:[#allocation2 + $0x50] sm:$0xff]  ;;  %s1285_s17 = scalar_lea.hbm %s1284_s16, 128  ;;  %p1290_p10 = scmp.lt.s32.totalorder %s1284_s16, %s1593_s3 }
  0x3b   : > { %420 = vmatpush.bf16.msra.mxu0 %v1079_v1  ;;  %1099 = vmatpush.bf16.msra.mxu3 %v1079_v1  ;;  %v1060_v14 = vld [vmem:[#allocation2 + $0x18] sm:$0xff]  ;;  %v1061_v16 = vld [vmem:[#allocation2 + $0x20] sm:$0xff]  ;;  %v1062_v18 = vld [vmem:[#allocation2 + $0x28] sm:$0xff]  ;;  %p1286_p1 = scmp.ne.s32.totalorder %s1284_s16, %s1285_s17  ;;  %p1291_p2 = scmp.lt.s32.totalorder %s1289_s11, %s1285_s17 }
  0x3c   : > { %v1068_v15 = vld [vmem:[#allocation2 + $0x58] sm:$0xff]  ;;  %v1069_v17 = vld [vmem:[#allocation2 + $0x60] sm:$0xff]  ;;  %v1070_v19 = vld [vmem:[#allocation2 + $0x68] sm:$0xff] }
  0x3d   : > { %v1063_v20 = vld [vmem:[#allocation2 + $0x30] sm:$0xff]  ;;  %v1064_v22 = vld [vmem:[#allocation2 + $0x38] sm:$0xff]  ;;  %p1287_p4 = pnand %p1286_p1, %p1439_p3  ;;  %p1292_p9 = por %p1291_p2, %p1290_p10 }
  0x3e   : > { %v1071_v21 = vld [vmem:[#allocation2 + $0x70] sm:$0xff]  ;;  %v1072_v23 = vld [vmem:[#allocation2 + $0x78] sm:$0xff] }
  0x3f   : > { %421 = vmatpush.bf16.msra.mxu0 %v1078_v2  ;;  %1100 = vmatpush.bf16.msra.mxu3 %v1078_v2  ;;  %p1288_p8 = pneg %p1287_p4 }
  0x41   : > { %p1293_p11 = pnand %p1292_p9, %p1288_p8 }
  0x43   : > { %422 = vmatpush.bf16.msra.mxu0 %v1077_v3  ;;  %1101 = vmatpush.bf16.msra.mxu3 %v1077_v3 }
  0x47   : > { %423 = vmatpush.bf16.msra.mxu0 %v1076_v4  ;;  %1102 = vmatpush.bf16.msra.mxu3 %v1076_v4 }
  0x4b   : > { %424 = vmatpush.bf16.msra.mxu0 %v1075_v5  ;;  %1103 = vmatpush.bf16.msra.mxu3 %v1075_v5 }
  0x4f   : > { %425 = vmatpush.bf16.msra.mxu0 %v1074_v6  ;;  %1104 = vmatpush.bf16.msra.mxu3 %v1074_v6 }
  0x53   : > { %426 = vmatpush.bf16.msra.mxu0 %v1073_v7  ;;  %1105 = vmatpush.bf16.msra.mxu3 %v1073_v7 }
  0x56   : > { %427 = vmatmul.bf16.vlgmr.msra.gmra.mxu0 %v1057_v8  ;;  %467 = vmatmul.bf16.vlgmr.msra.gmra.mxu3 %v1065_v9  ;;  %v988_v8 = vld [vmem:[%s1482_s28] sm:$0xf]  ;;  %v1082_v9 = vld [vmem:[%s1482_s28 + $0x4] sm:$0xf0] }
  0x66   : > { %432 = vmatmul.bf16.gmra.mxu0 %v1058_v10  ;;  %472 = vmatmul.bf16.gmra.mxu3 %v1066_v11  ;;  %v989_v10 = vor.u32 %v1082_v9, %v988_v8  ;;  %v1081_v11 = vld [vmem:[%s1482_s28 + $0x4] sm:$0xf] }
  0x76   : > { %437 = vmatmul.bf16.gmra.mxu0 %v1059_v12  ;;  %477 = vmatmul.bf16.gmra.mxu3 %v1067_v13  ;;  %v990_v12 = vld [vmem:[%s1482_s28 + $0x8] sm:$0xf0] }
  0x77   : > { %v993_v13 = vor.u32 %v1081_v11, %v990_v12 }
  0x86   : > { %442 = vmatmul.bf16.gmra.mxu0 %v1060_v14  ;;  %482 = vmatmul.bf16.gmra.mxu3 %v1068_v15  ;;  %v996_v14 = vld [vmem:[%s1482_s28 + $0x10] sm:$0xf]  ;;  %v1084_v15 = vld [vmem:[%s1482_s28 + $0x14] sm:$0xf0] }
  0x96   : > { %447 = vmatmul.bf16.gmra.mxu0 %v1061_v16  ;;  %487 = vmatmul.bf16.gmra.mxu3 %v1069_v17  ;;  %v997_v16 = vor.u32 %v1084_v15, %v996_v14  ;;  %v1083_v17 = vld [vmem:[%s1482_s28 + $0x14] sm:$0xf] }
  0xa6   : > { %452 = vmatmul.bf16.gmra.mxu0 %v1062_v18  ;;  %492 = vmatmul.bf16.gmra.mxu3 %v1070_v19  ;;  %v998_v18 = vld [vmem:[%s1482_s28 + $0x18] sm:$0xf0] }
  0xa7   : > { %v1001_v19 = vor.u32 %v1083_v17, %v998_v18 }
  0xb6   : > { %457 = vmatmul.bf16.gmra.mxu0 %v1063_v20  ;;  %497 = vmatmul.bf16.gmra.mxu3 %v1071_v21  ;;  %v1004_v20 = vld [vmem:[%s1482_s28 + $0x20] sm:$0xf]  ;;  %v1086_v21 = vld [vmem:[%s1482_s28 + $0x24] sm:$0xf0] }
  0xc6   : > { %462 = vmatmul.bf16.gmra.mxu0 %v1064_v22  ;;  %502 = vmatmul.bf16.gmra.mxu3 %v1072_v23  ;;  %v1005_v22 = vor.u32 %v1086_v21, %v1004_v20  ;;  %v1085_v23 = vld [vmem:[%s1482_s28 + $0x24] sm:$0xf] }
  0xd3   : > { %v1492_v24 = vpop.f32.mrf.mxu0 }
  0xd9   : > { %v1494_v25 = vpop.f32.mrf.mxu3 }
  0xdb   : > { %v430_v26 = vpop.f32.mrf.mxu0 }
  0xdc   : > { %v524_v27 = vpack.c.bf16 %v430_v26, %v1492_v24  ;;  %v1006_v24 = vld [vmem:[%s1482_s28 + $0x28] sm:$0xf0]  ;;  %v1012_v26 = vld [vmem:[%s1482_s28 + $0x30] sm:$0xf] }
  0xe1   : > { %v1497_v28 = vpop.f32.mrf.mxu3 }
  0xe2   : > { %v532_v29 = vpack.c.bf16 %v1497_v28, %v1494_v25  ;;  %v1009_v25 = vor.u32 %v1085_v23, %v1006_v24 }
  0xe3   : > { %v433_v30 = vpop.f32.mrf.mxu0 }
  0xe9   : > { %v473_v31 = vpop.f32.mrf.mxu3 }
  0xeb   : > { %v435_v32 = vpop.f32.mrf.mxu0 }
  0xec   : > { %v525_v33 = vpack.c.bf16 %v435_v32, %v433_v30  ;;  %v1014_v30 = vld [vmem:[%s1482_s28 + $0x38] sm:$0xf0]  ;;  %v1020_v32 = vld [vmem:[%s1482_s28 + $0x40] sm:$0xf] }
  0xf1   : > { %v475_v34 = vpop.f32.mrf.mxu3 }
  0xf2   : > { %v533_v35 = vpack.c.bf16 %v475_v34, %v473_v31 }
  0xf3   : > { %v438_v36 = vpop.f32.mrf.mxu0 }
  0xf9   : > { %v478_v37 = vpop.f32.mrf.mxu3 }
  0xfb   : > { %v440_v38 = vpop.f32.mrf.mxu0 }
  0xfc   : > { %v526_v39 = vpack.c.bf16 %v440_v38, %v438_v36  ;;  %v1022_v36 = vld [vmem:[%s1482_s28 + $0x48] sm:$0xf0]  ;;  %v1028_v38 = vld [vmem:[%s1482_s28 + $0x50] sm:$0xf] }
 0x101   : > { %v480_v40 = vpop.f32.mrf.mxu3 }
 0x102   : > { %v534_v41 = vpack.c.bf16 %v480_v40, %v478_v37 }
 0x103   : > { %v443_v42 = vpop.f32.mrf.mxu0 }
 0x109   : > { %v483_v43 = vpop.f32.mrf.mxu3 }
 0x10b   : > { %v445_v44 = vpop.f32.mrf.mxu0 }
 0x10c   : > { %v527_v45 = vpack.c.bf16 %v445_v44, %v443_v42  ;;  %v1030_v42 = vld [vmem:[%s1482_s28 + $0x58] sm:$0xf0]  ;;  %v1036_v44 = vld [vmem:[%s1482_s28 + $0x60] sm:$0xf] }
 0x111   : > { %v485_v46 = vpop.f32.mrf.mxu3 }
 0x112   : > { %v535_v47 = vpack.c.bf16 %v485_v46, %v483_v43 }
 0x113   : > { %v448_v48 = vpop.f32.mrf.mxu0 }
 0x119   : > { %v488_v49 = vpop.f32.mrf.mxu3 }
 0x11b   : > { %v450_v50 = vpop.f32.mrf.mxu0 }
 0x11c   : > { %v528_v5 = vpack.c.bf16 %v450_v50, %v448_v48  ;;  %v1038_v48 = vld [vmem:[%s1482_s28 + $0x68] sm:$0xf0]  ;;  %v1044_v50 = vld [vmem:[%s1482_s28 + $0x70] sm:$0xf] }
 0x121   : > { %v490_v51 = vpop.f32.mrf.mxu3 }
 0x122   : > { %v536_v7 = vpack.c.bf16 %v490_v51, %v488_v49  ;;  %v1096_v51 = vld [vmem:[%s1482_s28 + $0x74] sm:$0xf0] }
 0x123   : > { %v453_v52 = vpop.f32.mrf.mxu0 }
 0x129   : > { %v493_v53 = vpop.f32.mrf.mxu3 }
 0x12b   : > { %v455_v54 = vpop.f32.mrf.mxu0 }
 0x12c   : > { %v529_v3 = vpack.c.bf16 %v455_v54, %v453_v52  ;;  %v1045_v52 = vor.u32 %v1096_v51, %v1044_v50  ;;  %v1046_v54 = vld [vmem:[%s1482_s28 + $0x78] sm:$0xf0] }
 0x131   : > { %v495_v55 = vpop.f32.mrf.mxu3 }
 0x132   : > { %v537_v6 = vpack.c.bf16 %v495_v55, %v493_v53  ;;  %v1095_v53 = vld [vmem:[%s1482_s28 + $0x74] sm:$0xf] }
 0x133   : > { %v458_v56 = vpop.f32.mrf.mxu0  ;;  %v1049_v55 = vor.u32 %v1095_v53, %v1046_v54 }
 0x139   : > { %v498_v57 = vpop.f32.mrf.mxu3 }
 0x13b   : > { %v460_v58 = vpop.f32.mrf.mxu0 }
 0x13c   : > { %v530_v0 = vpack.c.bf16 %v460_v58, %v458_v56 }
 0x141   : > { %v500_v59 = vpop.f32.mrf.mxu3 }
 0x142   : > { %v538_v4 = vpack.c.bf16 %v500_v59, %v498_v57 }
 0x143   : > { %v463_v60 = vpop.f32.mrf.mxu0 }
 0x149   : > { %v503_v61 = vpop.f32.mrf.mxu3 }
 0x14b   : > { %v465_v62 = vpop.f32.mrf.mxu0 }
 0x14c   : > { %v531_v63 = vpack.c.bf16 %v465_v62, %v463_v60 }
 0x14e   : > { %620 = vmatpush.bf16.msra.mxu1 %v531_v63 }
 0x151   : > { %v505_v1 = vpop.f32.mrf.mxu3 }
 0x152   : > { %621 = vmatpush.bf16.msra.mxu1 %v530_v0  ;;  %v539_v2 = vpack.c.bf16 %v505_v1, %v503_v61 }
 0x154   : > { %669 = vmatpush.bf16.msra.mxu2 %v539_v2 }
 0x156   : > { %622 = vmatpush.bf16.msra.mxu1 %v529_v3 }
 0x158   : > { %670 = vmatpush.bf16.msra.mxu2 %v538_v4 }
 0x15a   : > { %623 = vmatpush.bf16.msra.mxu1 %v528_v5 }
 0x15c   : > { %671 = vmatpush.bf16.msra.mxu2 %v537_v6 }
 0x15e   : > { %624 = vmatpush.bf16.msra.mxu1 %v527_v45  ;;  %v1094_v45 = vld [vmem:[%s1482_s28 + $0x64] sm:$0xf0] }
 0x15f   : > { %v1037_v46 = vor.u32 %v1094_v45, %v1036_v44 }
 0x160   : > { %672 = vmatpush.bf16.msra.mxu2 %v536_v7 }
 0x162   : > { %625 = vmatpush.bf16.msra.mxu1 %v526_v39  ;;  %v1092_v39 = vld [vmem:[%s1482_s28 + $0x54] sm:$0xf0] }
 0x163   : > { %v1029_v40 = vor.u32 %v1092_v39, %v1028_v38 }
 0x164   : > { %673 = vmatpush.bf16.msra.mxu2 %v535_v47  ;;  %v1093_v47 = vld [vmem:[%s1482_s28 + $0x64] sm:$0xf] }
 0x165   : > { %v1041_v49 = vor.u32 %v1093_v47, %v1038_v48 }
 0x166   : > { %626 = vmatpush.bf16.msra.mxu1 %v525_v33  ;;  %v1090_v33 = vld [vmem:[%s1482_s28 + $0x44] sm:$0xf0] }
 0x167   : > { %v1021_v34 = vor.u32 %v1090_v33, %v1020_v32 }
 0x168   : > { %674 = vmatpush.bf16.msra.mxu2 %v534_v41  ;;  %v1091_v41 = vld [vmem:[%s1482_s28 + $0x54] sm:$0xf] }
 0x169   : > { %v1033_v43 = vor.u32 %v1091_v41, %v1030_v42 }
 0x16a   : > { %627 = vmatpush.bf16.msra.mxu1 %v524_v27  ;;  %v1088_v27 = vld [vmem:[%s1482_s28 + $0x34] sm:$0xf0] }
 0x16b   : > { %v1013_v28 = vor.u32 %v1088_v27, %v1012_v26 }
 0x16c   : > { %675 = vmatpush.bf16.msra.mxu2 %v533_v35  ;;  %v1089_v35 = vld [vmem:[%s1482_s28 + $0x44] sm:$0xf] }
 0x16d   : > { %628 = vmatmul.bf16.vlgmr.msra.gmra.mxu1 %v989_v10  ;;  %v1025_v37 = vor.u32 %v1089_v35, %v1022_v36 }
 0x170   : > { %676 = vmatpush.bf16.msra.mxu2 %v532_v29  ;;  %v1087_v29 = vld [vmem:[%s1482_s28 + $0x34] sm:$0xf] }
 0x171   : > { %v1017_v31 = vor.u32 %v1087_v29, %v1014_v30 }
 0x173   : > { %677 = vmatmul.bf16.vlgmr.msra.gmra.mxu2 %v993_v13 }
 0x17d   : > { %633 = vmatmul.bf16.gmra.mxu1 %v997_v16 }
 0x183   : > { %682 = vmatmul.bf16.gmra.mxu2 %v1001_v19 }
 0x18d   : > { %638 = vmatmul.bf16.gmra.mxu1 %v1005_v22 }
 0x193   : > { %687 = vmatmul.bf16.gmra.mxu2 %v1009_v25 }
 0x19d   : > { %643 = vmatmul.bf16.gmra.mxu1 %v1013_v28 }
 0x1a3   : > { %692 = vmatmul.bf16.gmra.mxu2 %v1017_v31 }
 0x1ad   : > { %648 = vmatmul.bf16.gmra.mxu1 %v1021_v34 }
 0x1b3   : > { %697 = vmatmul.bf16.gmra.mxu2 %v1025_v37 }
 0x1bd   : > { %653 = vmatmul.bf16.gmra.mxu1 %v1029_v40 }
 0x1c3   : > { %702 = vmatmul.bf16.gmra.mxu2 %v1033_v43 }
 0x1cd   : > { %658 = vmatmul.bf16.gmra.mxu1 %v1037_v46 }
 0x1d3   : > { %707 = vmatmul.bf16.gmra.mxu2 %v1041_v49 }
 0x1dd   : > { %663 = vmatmul.bf16.gmra.mxu1 %v1045_v52 }
 0x1e3   : > { %712 = vmatmul.bf16.gmra.mxu2 %v1049_v55 }
 0x1ea   : > { %v629_v56 = vpop.f32.mrf.mxu1 }
 0x1f2   : > { %v631_v57 = vpop.f32.mrf.mxu1 }
 0x1f6   : > { %v678_v58 = vpop.f32.mrf.mxu2 }
 0x1f7   : > { %v679_v59 = vadd.f32 %v678_v58, %v629_v56 }
 0x1f9   : > { %v718_v60 = vmul.f32 0.01, %v679_v59 }
 0x1fa   : > { %v634_v61 = vpop.f32.mrf.mxu1 }
 0x1fb   : > { %v734_v62 = vmax.f32 %v679_v59, %v718_v60 }
 0x1fd   : > { %750 = vst [vmem:[%s1537_s18] sm:$0xff] %v734_v62 }
 0x1fe   : > { %v680_v63 = vpop.f32.mrf.mxu2 }
 0x1ff   : > { %v681_v0 = vadd.f32 %v680_v63, %v631_v57 }
 0x201   : > { %v719_v1 = vmul.f32 0.01, %v681_v0 }
 0x202   : > { %v636_v2 = vpop.f32.mrf.mxu1 }
 0x203   : > { %v735_v3 = vmax.f32 %v681_v0, %v719_v1 }
 0x205   : > { %751 = vst [vmem:[%s1537_s18 + $0x8] sm:$0xff] %v735_v3 }
 0x206   : > { %v683_v4 = vpop.f32.mrf.mxu2 }
 0x207   : > { %v684_v5 = vadd.f32 %v683_v4, %v634_v61 }
 0x209   : > { %v720_v6 = vmul.f32 0.01, %v684_v5 }
 0x20a   : > { %v639_v7 = vpop.f32.mrf.mxu1 }
 0x20b   : > { %v736_v8 = vmax.f32 %v684_v5, %v720_v6 }
 0x20d   : > { %752 = vst [vmem:[%s1537_s18 + $0x10] sm:$0xff] %v736_v8 }
 0x20e   : > { %v685_v9 = vpop.f32.mrf.mxu2 }
 0x20f   : > { %v686_v10 = vadd.f32 %v685_v9, %v636_v2 }
 0x211   : > { %v721_v11 = vmul.f32 0.01, %v686_v10 }
 0x212   : > { %v641_v12 = vpop.f32.mrf.mxu1 }
 0x213   : > { %v737_v13 = vmax.f32 %v686_v10, %v721_v11 }
 0x215   : > { %753 = vst [vmem:[%s1537_s18 + $0x18] sm:$0xff] %v737_v13 }
 0x216   : > { %v688_v14 = vpop.f32.mrf.mxu2 }
 0x217   : > { %v689_v15 = vadd.f32 %v688_v14, %v639_v7 }
 0x219   : > { %v722_v16 = vmul.f32 0.01, %v689_v15 }
 0x21a   : > { %v644_v17 = vpop.f32.mrf.mxu1 }
 0x21b   : > { %v738_v18 = vmax.f32 %v689_v15, %v722_v16 }
 0x21d   : > { %754 = vst [vmem:[%s1537_s18 + $0x20] sm:$0xff] %v738_v18 }
 0x21e   : > { %v690_v19 = vpop.f32.mrf.mxu2 }
 0x21f   : > { %v691_v20 = vadd.f32 %v690_v19, %v641_v12 }
 0x221   : > { %v723_v21 = vmul.f32 0.01, %v691_v20 }
 0x222   : > { %v646_v22 = vpop.f32.mrf.mxu1 }
 0x223   : > { %v739_v23 = vmax.f32 %v691_v20, %v723_v21 }
 0x225   : > { %755 = vst [vmem:[%s1537_s18 + $0x28] sm:$0xff] %v739_v23 }
 0x226   : > { %v693_v24 = vpop.f32.mrf.mxu2 }
 0x227   : > { %v694_v25 = vadd.f32 %v693_v24, %v644_v17 }
 0x229   : > { %v724_v26 = vmul.f32 0.01, %v694_v25 }
 0x22a   : > { %v649_v27 = vpop.f32.mrf.mxu1 }
 0x22b   : > { %v740_v28 = vmax.f32 %v694_v25, %v724_v26 }
 0x22d   : > { %756 = vst [vmem:[%s1537_s18 + $0x30] sm:$0xff] %v740_v28 }
 0x22e   : > { %v695_v29 = vpop.f32.mrf.mxu2 }
 0x22f   : > { %v696_v30 = vadd.f32 %v695_v29, %v646_v22 }
 0x231   : > { %v725_v31 = vmul.f32 0.01, %v696_v30 }
 0x232   : > { %v651_v32 = vpop.f32.mrf.mxu1 }
 0x233   : > { %v741_v33 = vmax.f32 %v696_v30, %v725_v31 }
 0x235   : > { %757 = vst [vmem:[%s1537_s18 + $0x38] sm:$0xff] %v741_v33 }
 0x236   : > { %v698_v34 = vpop.f32.mrf.mxu2 }
 0x237   : > { %v699_v35 = vadd.f32 %v698_v34, %v649_v27 }
 0x239   : > { %v726_v36 = vmul.f32 0.01, %v699_v35 }
 0x23a   : > { %v654_v38 = vpop.f32.mrf.mxu1 }
 0x23b   : > { %v742_v37 = vmax.f32 %v699_v35, %v726_v36 }
 0x23d   : > { %758 = vst [vmem:[%s1537_s18 + $0x40] sm:$0xff] %v742_v37 }
 0x23e   : > { %v700_v39 = vpop.f32.mrf.mxu2 }
 0x23f   : > { %v701_v40 = vadd.f32 %v700_v39, %v651_v32 }
 0x241   : > { %v727_v41 = vmul.f32 0.01, %v701_v40 }
 0x242   : > { %v656_v43 = vpop.f32.mrf.mxu1 }
 0x243   : > { %v743_v42 = vmax.f32 %v701_v40, %v727_v41 }
 0x245   : > { %759 = vst [vmem:[%s1537_s18 + $0x48] sm:$0xff] %v743_v42 }
 0x246   : > { %v703_v44 = vpop.f32.mrf.mxu2 }
 0x247   : > { %v704_v45 = vadd.f32 %v703_v44, %v654_v38 }
 0x249   : > { %v728_v46 = vmul.f32 0.01, %v704_v45 }
 0x24a   : > { %v659_v50 = vpop.f32.mrf.mxu1 }
 0x24b   : > { %v744_v47 = vmax.f32 %v704_v45, %v728_v46 }
 0x24d   : > { %760 = vst [vmem:[%s1537_s18 + $0x50] sm:$0xff] %v744_v47 }
 0x24e   : > { %v705_v48 = vpop.f32.mrf.mxu2 }
 0x24f   : > { %v706_v49 = vadd.f32 %v705_v48, %v656_v43 }
 0x251   : > { %v729_v51 = vmul.f32 0.01, %v706_v49 }
 0x252   : > { %v661_v56 = vpop.f32.mrf.mxu1 }
 0x253   : > { %v745_v52 = vmax.f32 %v706_v49, %v729_v51 }
 0x255   : > { %761 = vst [vmem:[%s1537_s18 + $0x58] sm:$0xff] %v745_v52 }
 0x256   : > { %v708_v53 = vpop.f32.mrf.mxu2 }
 0x257   : > { %v709_v54 = vadd.f32 %v708_v53, %v659_v50 }
 0x259   : > { %v730_v55 = vmul.f32 0.01, %v709_v54 }
 0x25a   : > { %v664_v62 = vpop.f32.mrf.mxu1 }
 0x25b   : > { %v746_v57 = vmax.f32 %v709_v54, %v730_v55 }
 0x25d   : > { %762 = vst [vmem:[%s1537_s18 + $0x60] sm:$0xff] %v746_v57 }
 0x25e   : > { %v710_v58 = vpop.f32.mrf.mxu2 }
 0x25f   : > { %v711_v59 = vadd.f32 %v710_v58, %v661_v56 }
 0x261   : > { %v731_v60 = vmul.f32 0.01, %v711_v59 }
 0x262   : > { %v666_v3 = vpop.f32.mrf.mxu1 }
 0x263   : > { %v747_v61 = vmax.f32 %v711_v59, %v731_v60 }
 0x265   : > { %763 = vst [vmem:[%s1537_s18 + $0x68] sm:$0xff] %v747_v61 }
 0x266   : > { %v713_v63 = vpop.f32.mrf.mxu2 }
 0x267   : > { %v714_v0 = vadd.f32 %v713_v63, %v664_v62 }
 0x269   : > { %v732_v1 = vmul.f32 0.01, %v714_v0 }
 0x26b   : > { %v748_v2 = vmax.f32 %v714_v0, %v732_v1 }
 0x26d   : > { %764 = vst [vmem:[%s1537_s18 + $0x70] sm:$0xff] %v748_v2 }
 0x26e   : > { %v715_v4 = vpop.f32.mrf.mxu2 }
 0x26f   : > { %v716_v5 = vadd.f32 %v715_v4, %v666_v3 }
 0x271   : > { %v733_v6 = vmul.f32 0.01, %v716_v5 }
 0x273   : > { %v749_v7 = vmax.f32 %v716_v5, %v733_v6 }
 0x275   : > { %765 = vst [vmem:[%s1537_s18 + $0x78] sm:$0xff] %v749_v7 }
 0x276   : > { %1296 = shalt.err (!%p1293_p11)
}
 0x277   : > { %s1351_s25 = smov 128   ;;  %s1352_s27 = smov 8  }
 0x278   : > { %1116 = dma.vmem_to_hbm [thread:$0]  (%p1439_p3), %s780_s5, 2048, %s782_s7, %s767_s8, %s1351_s25, %s1351_s25, %s1352_s27  }
 0x279 PF: > { %s796_s26 = sand.u32 1, %s1331_s12   ;;  %p1599_p12 = scmp.ge.s32.totalorder %s1343_s15, 2 }
 0x27a   : > { %s797_s28 = scalar_lea.sflag [#allocation4], %s796_s26 }
 0x27b   : > { %p1130_p13 = pnand %p1599_p12, %p1408_p6 }
 0x27d   : > { %p1131_p0 = pneg %p1130_p13 }
 0x27f   : > { %1326 = dma.done.wait (%p1131_p0), %s797_s28, 2048  }
 0x280   : > { %1328 = vsyncadd (%p1131_p0), %s797_s28, 4294965248  ;;  %p17_p5 = scmp.ge.s32.totalorder %s1429_s6, 4   ;;  %s1600_s12 = smov %s1335_s13 }
 0x281   : > { %s1601_s13 = smov %s1339_s14  ;;  %s1602_s14 = smov %s1445_s10 }
 0x282   : > { %s1603_s15 = smov %s1429_s6  ;;  %19 = sbr.rel (!%p17_p5) target bundleno = 6 (0x6), region = 86 }
 0x287   :  { %803 = vsyncpa [#allocation3], 1 }
 0x288   :  { %805 = vsyncpa [#allocation3 + $0x1], 1 }
 0x289   :  { %806 = vsyncpa [#allocation6], 1 }
 0x28a   :  { %808 = vsyncpa [#allocation6 + $0x1], 1 }
 0x28b   :  { %809 = vsyncpa [#allocation4], 1 }
 0x28c   :  { %811 = vsyncpa [#allocation4 + $0x1], 1 }

</bundles_post_ra>
